<compile_context>
chip_gen: v7x
topology: tpu7x:2x2x1
jax: 0.10.0
libtpu: 0.0.40
codegen_flags: <defaults>
</compile_context>

<pallas_src>
import functools
import math

import jax
import jax.numpy as jnp
from jax.experimental import pallas as pl
from jax.experimental.pallas import tpu as pltpu


_MASK_VALUE = -1e30  # large-negative finite mask for padded key positions


def _flash_sdpa_kernel(q_ref, k_ref, v_ref, o_ref,
                       q_sc, m_sc, l_sc, acc_sc, *,
                       inv_temperature, kv_tile, lk_valid, exp_dtype):
    kv = pl.program_id(2)
    last_kv = pl.num_programs(2) - 1

    @pl.when(kv == 0)
    def _init():
        # Hoist q * (1/temperature) out of the kv loop: the q block index is
        # constant across the kv axis, so scale once and reuse from scratch.
        q_sc[...] = q_ref[...] * jnp.asarray(inv_temperature, dtype=q_ref.dtype)
        m_sc[...] = jnp.full(m_sc.shape, -jnp.inf, dtype=m_sc.dtype)
        l_sc[...] = jnp.zeros(l_sc.shape, dtype=l_sc.dtype)
        acc_sc[...] = jnp.zeros(acc_sc.shape, dtype=acc_sc.dtype)

    # (hb, tq, tk) scores; contraction over the native Dk, f32 MXU accumulation,
    # no explicit transpose of k.
    s = jnp.einsum("bqd,bkd->bqk", q_sc[...], k_ref[...],
                   preferred_element_type=jnp.float32)

    if lk_valid is not None:
        # Only the last kv tile can contain zero-padded key positions, so gate
        # the iota + compare + select behind a runtime branch; the other
        # Lk/tk - 1 steps pay nothing.  The last tile always contains >= 1 valid
        # key (lk_p - Lk < tk), so a fully-masked tile — the online-softmax
        # hazard where m_new == _MASK_VALUE — cannot occur here.
        def _mask(x):
            key_idx = kv * kv_tile + jax.lax.broadcasted_iota(jnp.int32, x.shape, 2)
            return jnp.where(key_idx < lk_valid, x, _MASK_VALUE)

        s = jax.lax.cond(kv == last_kv, _mask, lambda x: x, s)

    m_prev = m_sc[...]
    m_new = jnp.maximum(m_prev, jnp.max(s, axis=-1, keepdims=True))
    alpha = jnp.exp(m_prev - m_new)
    # exp_dtype is bf16 on v6e/v7x for bf16 inputs (bf16 EUP, p already in the
    # PV-matmul dtype); f32 otherwise (m/l/alpha stay f32 in all cases).
    p = jnp.exp((s - m_new).astype(exp_dtype))
    l_sc[...] = alpha * l_sc[...] + jnp.sum(p, axis=-1, keepdims=True,
                                            dtype=jnp.float32)
    acc_sc[...] = alpha * acc_sc[...] + jnp.einsum(
        "bqk,bkd->bqd", p.astype(v_ref.dtype), v_ref[...],
        preferred_element_type=jnp.float32)
    m_sc[...] = m_new

    @pl.when(kv == last_kv)
    def _finalize():
        # Normalize after the PV matmul: (tq, Dv) scaling. Exact reciprocal —
        # finalize runs once per q tile, so approx=False is essentially free.
        inv_l = pl.reciprocal(l_sc[...], approx=False)
        o_ref[...] = (acc_sc[...] * inv_l).astype(o_ref.dtype)


def _round_up(x, m):
    return ((x + m - 1) // m) * m


def _largest_divisor_at_most(n, x):
    x = max(1, min(n, x))
    for d in range(x, 0, -1):
        if n % d == 0:
            return d
    return 1


def _tpu_generation():
    try:
        kind = jax.devices()[0].device_kind.lower()
    except Exception:
        return None
    for tag, gen in (("v7", 7), ("v6", 6), ("v5", 5), ("v4", 4)):
        if tag in kind:
            return gen
    return None


def scaled_dot_product_attention(q, k, v, temperature, *,
                                 head_block=None, q_block=None, kv_block=256):
    """softmax((q / temperature) @ k^T) @ v  with flash-style tiling.

    q: (B, H, Lq, Dk), k: (B, H, Lk, Dk), v: (B, H, Lk, Dv) -> (B, H, Lq, Dv).
    """
    B, H, Lq, Dk = q.shape
    Lk = k.shape[2]
    Dv = v.shape[3]
    BH = B * H

    gen = _tpu_generation()

    # --- Tile selection (generation aware) -----------------------------------
    # v6e/v7x HBM ridge on the K/V stream is ~620-650 flops/byte -> tq >= 512.
    # v5e ridge is ~240 flops/byte -> tq = 256 already suffices; bigger tiles
    # only add VMEM pressure there.
    if q_block is None:
        q_block = 512 if (gen is not None and gen >= 6) else 256
    if head_block is None:
        head_block = 4 if (gen is not None and gen >= 6) else 8

    tq = min(q_block, _round_up(Lq, 8))
    tk = min(kv_block, _round_up(Lk, 8))

    hb = _largest_divisor_at_most(BH, head_block)
    # v7x: make sure the head/batch grid axis spans both TensorCores
    # (grid dim 0 >= 2 under dimension_semantics=("parallel", ...)).
    if gen is not None and gen >= 7 and BH >= 2:
        hb = _largest_divisor_at_most(BH, min(hb, BH // 2))

    in_bytes = jnp.dtype(q.dtype).itemsize
    out_bytes = in_bytes

    def vmem_need(hb_, tq_, tk_):
        dbl = 2  # double-buffered pipeline blocks
        return (dbl * hb_ * (tq_ * Dk + tk_ * Dk + tk_ * Dv) * in_bytes
                + dbl * hb_ * tq_ * Dv * out_bytes
                + hb_ * tq_ * Dk * in_bytes            # scaled-q scratch
                + hb_ * tq_ * (2 + Dv) * 4)            # m, l, acc (f32)

    # v7x has only 64 MiB physical VMEM per TensorCore -> cap well below it;
    # v5e/v6e have 128 MiB, still keep generous headroom.
    vmem_cap = (48 << 20) if (gen is None or gen >= 7) else (64 << 20)
    while vmem_need(hb, tq, tk) > vmem_cap:
        if hb > 1:
            hb = _largest_divisor_at_most(BH, hb // 2)
        elif tq > 128:
            tq = _round_up(max(tq // 2, 8), 8)
        elif tk > 128:
            tk = _round_up(max(tk // 2, 8), 8)
        else:
            break

    lq_p = _round_up(Lq, tq)
    lk_p = _round_up(Lk, tk)

    # No head-dim padding: the last block dim equals the full array extent, which
    # the (8,128) rule allows.  Pad the sequence dims only when the tile does not
    # divide them (free / statically elided otherwise).
    qf = q.reshape(BH, Lq, Dk)
    kf = k.reshape(BH, Lk, Dk)
    vf = v.reshape(BH, Lk, Dv)
    if lq_p != Lq:
        qf = jnp.pad(qf, ((0, 0), (0, lq_p - Lq), (0, 0)))
    if lk_p != Lk:
        kf = jnp.pad(kf, ((0, 0), (0, lk_p - Lk), (0, 0)))
        vf = jnp.pad(vf, ((0, 0), (0, lk_p - Lk), (0, 0)))

    # bf16 exp only on chips with a bf16 EUP (v6e/v7x) and only for bf16 inputs;
    # never on v5e, never for f32 inputs (accuracy).
    exp_dtype = (jnp.bfloat16
                 if (gen is not None and gen >= 6 and v.dtype == jnp.bfloat16)
                 else jnp.float32)

    grid = (BH // hb, lq_p // tq, lk_p // tk)

    kernel = functools.partial(
        _flash_sdpa_kernel,
        inv_temperature=1.0 / float(temperature),
        kv_tile=tk,
        lk_valid=(Lk if lk_p != Lk else None),
        exp_dtype=exp_dtype,
    )

    cost = pl.CostEstimate(
        flops=2 * BH * lq_p * lk_p * (Dk + Dv),
        transcendentals=BH * lq_p * lk_p,
        bytes_accessed=(qf.size + kf.size + vf.size) * in_bytes
        + BH * lq_p * Dv * out_bytes,
    )

    out = pl.pallas_call(
        kernel,
        out_shape=jax.ShapeDtypeStruct((BH, lq_p, Dv), q.dtype),
        grid_spec=pltpu.PrefetchScalarGridSpec(
            num_scalar_prefetch=0,
            grid=grid,
            in_specs=[
                pl.BlockSpec((hb, tq, Dk), lambda b, i, j: (b, i, 0)),
                pl.BlockSpec((hb, tk, Dk), lambda b, i, j: (b, j, 0)),
                pl.BlockSpec((hb, tk, Dv), lambda b, i, j: (b, j, 0)),
            ],
            out_specs=pl.BlockSpec((hb, tq, Dv), lambda b, i, j: (b, i, 0)),
            scratch_shapes=[
                pltpu.VMEM((hb, tq, Dk), q.dtype),       # scaled q (kv-invariant)
                pltpu.VMEM((hb, tq, 1), jnp.float32),    # running max m
                pltpu.VMEM((hb, tq, 1), jnp.float32),    # running denom l
                pltpu.VMEM((hb, tq, Dv), jnp.float32),   # unnormalized acc
            ],
        ),
        compiler_params=pltpu.CompilerParams(
            dimension_semantics=("parallel", "parallel", "arbitrary"),
            vmem_limit_bytes=int(min(vmem_cap,
                                     max(32 << 20, 2 * vmem_need(hb, tq, tk)))),
        ),
        cost_estimate=cost,
    )(qf, kf, vf)

    if lq_p != Lq:
        out = out[:, :Lq, :]
    return out.reshape(B, H, Lq, Dv)


def _reference(q, k, v, temperature):
    s = jnp.einsum("bhqd,bhkd->bhqk", q / temperature, k)
    attn = jax.nn.softmax(s, axis=-1)
    return jnp.einsum("bhqk,bhkd->bhqd", attn, v)


if __name__ == "__main__":
    # Small shapes consistent with the module's forward:
    # batch=2, heads=2, seq=8, d_k=d_v=32
    B, H, L, Dk, Dv = 2, 2, 8, 32, 32
    temperature = math.sqrt(Dk)

    key = jax.random.PRNGKey(0)
    k1, k2, k3 = jax.random.split(key, 3)
    q = jax.random.normal(k1, (B, H, L, Dk), dtype=jnp.float32)
    k = jax.random.normal(k2, (B, H, L, Dk), dtype=jnp.float32)
    v = jax.random.normal(k3, (B, H, L, Dv), dtype=jnp.float32)

    out = scaled_dot_product_attention(q, k, v, temperature)
    out = jax.block_until_ready(out)

    ref = _reference(q, k, v, temperature)
    assert out.shape == (B, H, L, Dv)
    assert jnp.allclose(out, ref, atol=1e-3, rtol=1e-3), float(
        jnp.max(jnp.abs(out - ref)))
    print("KERNEL_OK")
</pallas_src>

<mosaic_0001>
module attributes {stable_mosaic.version = 11 : i64} {
  func.func @_flash_sdpa_kernel(%arg0: i32, %arg1: i32, %arg2: i32, %arg3: memref<4x8x32xf32, #tpu.memory_space<vmem>>, %arg4: memref<4x8x32xf32, #tpu.memory_space<vmem>>, %arg5: memref<4x8x32xf32, #tpu.memory_space<vmem>>, %arg6: memref<4x8x32xf32, #tpu.memory_space<vmem>>, %arg7: memref<4x8x32xf32, #tpu.memory_space<vmem>>, %arg8: memref<4x8x1xf32, #tpu.memory_space<vmem>>, %arg9: memref<4x8x1xf32, #tpu.memory_space<vmem>>, %arg10: memref<4x8x32xf32, #tpu.memory_space<vmem>>) attributes {dimension_semantics = [#tpu.dimension_semantics<parallel>, #tpu.dimension_semantics<parallel>, #tpu.dimension_semantics<arbitrary>], iteration_bounds = array<i64: 1, 1, 1>, scalar_prefetch = 0 : i64, scratch_operands = 4 : i64, tpu.core_type = #tpu.core_type<tc>, window_params = [{transform_indices = @transform_0, window_bounds = array<i64: 4, 8, 32>}, {transform_indices = @transform_1, window_bounds = array<i64: 4, 8, 32>}, {transform_indices = @transform_2, window_bounds = array<i64: 4, 8, 32>}, {transform_indices = @transform_3, window_bounds = array<i64: 4, 8, 32>}]} {
    %c0_i32 = arith.constant 0 : i32
    %0 = arith.cmpi eq, %arg2, %c0_i32 : i32
    %1 = arith.extui %0 : i1 to i32
    %c0_i32_0 = arith.constant 0 : i32
    %2 = arith.cmpi ne, %1, %c0_i32_0 : i32
    scf.if %2 {
      %c0_32 = arith.constant 0 : index
      %c0_33 = arith.constant 0 : index
      %c0_34 = arith.constant 0 : index
      %32 = vector.load %arg3[%c0_32, %c0_33, %c0_34] : memref<4x8x32xf32, #tpu.memory_space<vmem>>, vector<4x8x32xf32>
      %cst_35 = arith.constant 0.176776692 : f32
      %33 = vector.broadcast %cst_35 : f32 to vector<4x8x32xf32>
      %34 = arith.mulf %32, %33 : vector<4x8x32xf32>
      %c0_36 = arith.constant 0 : index
      %c0_37 = arith.constant 0 : index
      %c0_38 = arith.constant 0 : index
      %35 = vector.load %arg7[%c0_36, %c0_37, %c0_38] : memref<4x8x32xf32, #tpu.memory_space<vmem>>, vector<4x8x32xf32>
      tpu.vector_store %arg7[%c0_36, %c0_37, %c0_38], %34 {strides = array<i32>} : memref<4x8x32xf32, #tpu.memory_space<vmem>>, vector<4x8x32xf32>,
      %cst_39 = arith.constant 0xFF800000 : f32
      %36 = vector.broadcast %cst_39 : f32 to vector<4x8x1xf32>
      %c0_40 = arith.constant 0 : index
      %c0_41 = arith.constant 0 : index
      %c0_42 = arith.constant 0 : index
      %37 = vector.load %arg8[%c0_40, %c0_41, %c0_42] : memref<4x8x1xf32, #tpu.memory_space<vmem>>, vector<4x8x1xf32>
      tpu.vector_store %arg8[%c0_40, %c0_41, %c0_42], %36 {strides = array<i32>} : memref<4x8x1xf32, #tpu.memory_space<vmem>>, vector<4x8x1xf32>,
      %cst_43 = arith.constant 0.000000e+00 : f32
      %38 = vector.broadcast %cst_43 : f32 to vector<4x8x1xf32>
      %c0_44 = arith.constant 0 : index
      %c0_45 = arith.constant 0 : index
      %c0_46 = arith.constant 0 : index
      %39 = vector.load %arg9[%c0_44, %c0_45, %c0_46] : memref<4x8x1xf32, #tpu.memory_space<vmem>>, vector<4x8x1xf32>
      tpu.vector_store %arg9[%c0_44, %c0_45, %c0_46], %38 {strides = array<i32>} : memref<4x8x1xf32, #tpu.memory_space<vmem>>, vector<4x8x1xf32>,
      %cst_47 = arith.constant 0.000000e+00 : f32
      %40 = vector.broadcast %cst_47 : f32 to vector<4x8x32xf32>
      %c0_48 = arith.constant 0 : index
      %c0_49 = arith.constant 0 : index
      %c0_50 = arith.constant 0 : index
      %41 = vector.load %arg10[%c0_48, %c0_49, %c0_50] : memref<4x8x32xf32, #tpu.memory_space<vmem>>, vector<4x8x32xf32>
      tpu.vector_store %arg10[%c0_48, %c0_49, %c0_50], %40 {strides = array<i32>} : memref<4x8x32xf32, #tpu.memory_space<vmem>>, vector<4x8x32xf32>,
    } else {
    }
    %c0 = arith.constant 0 : index
    %c0_1 = arith.constant 0 : index
    %c0_2 = arith.constant 0 : index
    %3 = vector.load %arg7[%c0, %c0_1, %c0_2] : memref<4x8x32xf32, #tpu.memory_space<vmem>>, vector<4x8x32xf32>
    %c0_3 = arith.constant 0 : index
    %c0_4 = arith.constant 0 : index
    %c0_5 = arith.constant 0 : index
    %4 = vector.load %arg4[%c0_3, %c0_4, %c0_5] : memref<4x8x32xf32, #tpu.memory_space<vmem>>, vector<4x8x32xf32>
    "tpu.trace_start"() <{level = 10 : i32, message = "bqd,bkd->bqk"}> : () -> ()
    %cst = arith.constant dense<0.000000e+00> : vector<4x8x8xf32>
    %5 = tpu.matmul %3, %4, %cst {dimension_numbers = #tpu.dot_dimension_numbers<[2], [2], [1], [1], [0, 0, 0, 1, 1, 1], [0], [0]>} : vector<4x8x32xf32>, vector<4x8x32xf32>, vector<4x8x8xf32> -> vector<4x8x8xf32>
    "tpu.trace_stop"() : () -> ()
    %c0_6 = arith.constant 0 : index
    %c0_7 = arith.constant 0 : index
    %c0_8 = arith.constant 0 : index
    %6 = vector.load %arg8[%c0_6, %c0_7, %c0_8] : memref<4x8x1xf32, #tpu.memory_space<vmem>>, vector<4x8x1xf32>
    %cst_9 = arith.constant dense<0xFF800000> : vector<4x8xf32>
    %7 = vector.multi_reduction <maximumf>, %5, %cst_9 [2] : vector<4x8x8xf32> to vector<4x8xf32>
    %8 = vector.shape_cast %7 : vector<4x8xf32> to vector<4x8x1xf32>
    %9 = arith.maximumf %6, %8 : vector<4x8x1xf32>
    %10 = arith.subf %6, %9 : vector<4x8x1xf32>
    %11 = math.exp %10 : vector<4x8x1xf32>
    %12 = vector.broadcast %9 : vector<4x8x1xf32> to vector<4x8x8xf32>
    %13 = arith.subf %5, %12 : vector<4x8x8xf32>
    %14 = math.exp %13 : vector<4x8x8xf32>
    %c0_10 = arith.constant 0 : index
    %c0_11 = arith.constant 0 : index
    %c0_12 = arith.constant 0 : index
    %15 = vector.load %arg9[%c0_10, %c0_11, %c0_12] : memref<4x8x1xf32, #tpu.memory_space<vmem>>, vector<4x8x1xf32>
    %16 = arith.mulf %11, %15 : vector<4x8x1xf32>
    %cst_13 = arith.constant dense<0.000000e+00> : vector<4x8xf32>
    %17 = vector.multi_reduction <add>, %14, %cst_13 [2] : vector<4x8x8xf32> to vector<4x8xf32>
    %18 = vector.shape_cast %17 : vector<4x8xf32> to vector<4x8x1xf32>
    %19 = arith.addf %16, %18 : vector<4x8x1xf32>
    %c0_14 = arith.constant 0 : index
    %c0_15 = arith.constant 0 : index
    %c0_16 = arith.constant 0 : index
    %20 = vector.load %arg9[%c0_14, %c0_15, %c0_16] : memref<4x8x1xf32, #tpu.memory_space<vmem>>, vector<4x8x1xf32>
    tpu.vector_store %arg9[%c0_14, %c0_15, %c0_16], %19 {strides = array<i32>} : memref<4x8x1xf32, #tpu.memory_space<vmem>>, vector<4x8x1xf32>,
    %c0_17 = arith.constant 0 : index
    %c0_18 = arith.constant 0 : index
    %c0_19 = arith.constant 0 : index
    %21 = vector.load %arg10[%c0_17, %c0_18, %c0_19] : memref<4x8x32xf32, #tpu.memory_space<vmem>>, vector<4x8x32xf32>
    %22 = vector.broadcast %11 : vector<4x8x1xf32> to vector<4x8x32xf32>
    %23 = arith.mulf %22, %21 : vector<4x8x32xf32>
    %c0_20 = arith.constant 0 : index
    %c0_21 = arith.constant 0 : index
    %c0_22 = arith.constant 0 : index
    %24 = vector.load %arg5[%c0_20, %c0_21, %c0_22] : memref<4x8x32xf32, #tpu.memory_space<vmem>>, vector<4x8x32xf32>
    "tpu.trace_start"() <{level = 10 : i32, message = "bqk,bkd->bqd"}> : () -> ()
    %cst_23 = arith.constant dense<0.000000e+00> : vector<4x8x32xf32>
    %25 = tpu.matmul %14, %24, %cst_23 {dimension_numbers = #tpu.dot_dimension_numbers<[2], [1], [1], [2], [0, 0, 0, 1, 1, 2], [0], [0]>} : vector<4x8x8xf32>, vector<4x8x32xf32>, vector<4x8x32xf32> -> vector<4x8x32xf32>
    "tpu.trace_stop"() : () -> ()
    %26 = arith.addf %23, %25 : vector<4x8x32xf32>
    %c0_24 = arith.constant 0 : index
    %c0_25 = arith.constant 0 : index
    %c0_26 = arith.constant 0 : index
    %27 = vector.load %arg10[%c0_24, %c0_25, %c0_26] : memref<4x8x32xf32, #tpu.memory_space<vmem>>, vector<4x8x32xf32>
    tpu.vector_store %arg10[%c0_24, %c0_25, %c0_26], %26 {strides = array<i32>} : memref<4x8x32xf32, #tpu.memory_space<vmem>>, vector<4x8x32xf32>,
    %c0_27 = arith.constant 0 : index
    %c0_28 = arith.constant 0 : index
    %c0_29 = arith.constant 0 : index
    %28 = vector.load %arg8[%c0_27, %c0_28, %c0_29] : memref<4x8x1xf32, #tpu.memory_space<vmem>>, vector<4x8x1xf32>
    tpu.vector_store %arg8[%c0_27, %c0_28, %c0_29], %9 {strides = array<i32>} : memref<4x8x1xf32, #tpu.memory_space<vmem>>, vector<4x8x1xf32>,
    %c0_i32_30 = arith.constant 0 : i32
    %29 = arith.cmpi eq, %arg2, %c0_i32_30 : i32
    %30 = arith.extui %29 : i1 to i32
    %c0_i32_31 = arith.constant 0 : i32
    %31 = arith.cmpi ne, %30, %c0_i32_31 : i32
    scf.if %31 {
      %c0_32 = arith.constant 0 : index
      %c0_33 = arith.constant 0 : index
      %c0_34 = arith.constant 0 : index
      %32 = vector.load %arg9[%c0_32, %c0_33, %c0_34] : memref<4x8x1xf32, #tpu.memory_space<vmem>>, vector<4x8x1xf32>
      %33 = tpu.reciprocal %32 : vector<4x8x1xf32> -> vector<4x8x1xf32>
      %c0_35 = arith.constant 0 : index
      %c0_36 = arith.constant 0 : index
      %c0_37 = arith.constant 0 : index
      %34 = vector.load %arg10[%c0_35, %c0_36, %c0_37] : memref<4x8x32xf32, #tpu.memory_space<vmem>>, vector<4x8x32xf32>
      %35 = vector.broadcast %33 : vector<4x8x1xf32> to vector<4x8x32xf32>
      %36 = arith.mulf %34, %35 : vector<4x8x32xf32>
      %c0_38 = arith.constant 0 : index
      %c0_39 = arith.constant 0 : index
      %c0_40 = arith.constant 0 : index
      %37 = vector.load %arg6[%c0_38, %c0_39, %c0_40] : memref<4x8x32xf32, #tpu.memory_space<vmem>>, vector<4x8x32xf32>
      tpu.vector_store %arg6[%c0_38, %c0_39, %c0_40], %36 {strides = array<i32>} : memref<4x8x32xf32, #tpu.memory_space<vmem>>, vector<4x8x32xf32>,
    } else {
    }
    return
  }
  func.func @transform_0(%arg0: i32, %arg1: i32, %arg2: i32) -> (i32, i32, i32) {
    %c0_i32 = arith.constant 0 : i32
    %c0_i32_0 = arith.constant 0 : i32
    return %arg0, %arg1, %c0_i32 : i32, i32, i32
  }
  func.func @transform_1(%arg0: i32, %arg1: i32, %arg2: i32) -> (i32, i32, i32) {
    %c0_i32 = arith.constant 0 : i32
    %c0_i32_0 = arith.constant 0 : i32
    return %arg0, %arg2, %c0_i32 : i32, i32, i32
  }
  func.func @transform_2(%arg0: i32, %arg1: i32, %arg2: i32) -> (i32, i32, i32) {
    %c0_i32 = arith.constant 0 : i32
    %c0_i32_0 = arith.constant 0 : i32
    return %arg0, %arg2, %c0_i32 : i32, i32, i32
  }
  func.func @transform_3(%arg0: i32, %arg1: i32, %arg2: i32) -> (i32, i32, i32) {
    %c0_i32 = arith.constant 0 : i32
    %c0_i32_0 = arith.constant 0 : i32
    return %arg0, %arg1, %c0_i32 : i32, i32, i32
  }
}

</mosaic_0001>

<bundles_post_ra>
// kernel: tpu_custom_call.1
= control target key start
LH: loop header
LB: loop body
LE: loop exit
PB: predicated region body
PF: predicated region fallthrough
CT: control target
= control target key end

     0   :  { %8 = vsyncpa [#allocation7], 0  ;;  %s1285_s0 = inlined_call_operand.hbm [shape: f32[4,8,32], index: 0, kind: input, shape index: {}]   ;;  %s1286_s1 = inlined_call_operand.hbm [shape: f32[4,8,32], index: 1, kind: input, shape index: {}]   ;;  %s1287_s2 = inlined_call_operand.hbm [shape: f32[4,8,32], index: 2, kind: input, shape index: {}]   ;;  %s1288_s3 = inlined_call_operand.hbm [shape: f32[4,8,32], index: 3, kind: output, shape index: {}]  }
   0x1   :  { %9 = vsyncpa [#allocation10], 0 }
   0x2   :  { %10 = vsyncpa [#allocation8], 0  ;;  %s1088_s12 = smov [#allocation9]   ;;  %s1089_s14 = smov [#allocation6]  }
   0x3   :  { %s28_s13 = sshll.u32 %s1088_s12, 4  ;;  %s16_s15 = sshll.u32 %s1089_s14, 4  ;;  %s29_s13 = int_to_ptr.vmem [resolvable:$true] %s28_s13  ;;  %s1118_s15 = int_to_ptr.vmem [resolvable:$true] %s16_s15 }
   0x4   :  { %s994_s18 = scalar_lea.hbm %s1286_s1, 512 }
   0x5   :  { %p995_p0 = scmp.ne.s32.totalorder %s1286_s1, %s994_s18  ;;  %p998_p1 = scmp.lt.u32.totalorder %s994_s18, %s1286_s1 }
   0x7   :  { %p1000_p2 = pnand %p998_p1, %p995_p0 }
   0x9   :  { %1003 = shalt.err (!%p1000_p2)
}
   0xa   :  { %s1004_s23 = scalar_lea.vmem %s29_s13, 512  ;;  %p1009_p4 = scmp.lt.s32.totalorder %s29_s13, %s29_s13 }
   0xb   :  { %p1005_p3 = scmp.ne.s32.totalorder %s29_s13, %s1004_s23  ;;  %p1010_p5 = scmp.lt.s32.totalorder %s1004_s23, %s1004_s23 }
   0xd   :  { %p1011_p6 = por %p1010_p5, %p1009_p4 }
   0xf   :  { %p1012_p7 = pnand %p1011_p6, %p1005_p3 }
  0x11   :  { %1015 = shalt.err (!%p1012_p7)
}
  0x12   :  { %s1090_s24 = smov 128   ;;  %s1091_s25 = smov 8  }
  0x13   :  { %34 = dma.hbm_to_vmem [thread:$0]  %s1286_s1, 512, %s29_s13, [#allocation10], %s1090_s24, %s1090_s24, %s1091_s25  }
  0x14   :  { %s1016_s30 = scalar_lea.hbm %s1285_s0, 512 }
  0x15   :  { %p1017_p8 = scmp.ne.s32.totalorder %s1285_s0, %s1016_s30  ;;  %p1020_p9 = scmp.lt.u32.totalorder %s1016_s30, %s1285_s0 }
  0x17   :  { %p1022_p10 = pnand %p1020_p9, %p1017_p8 }
  0x19   :  { %1025 = shalt.err (!%p1022_p10)
}
  0x1a   :  { %s1026_s8 = scalar_lea.vmem %s1118_s15, 512  ;;  %p1031_p12 = scmp.lt.s32.totalorder %s1118_s15, %s1118_s15 }
  0x1b   :  { %p1027_p11 = scmp.ne.s32.totalorder %s1118_s15, %s1026_s8  ;;  %p1032_p13 = scmp.lt.s32.totalorder %s1026_s8, %s1026_s8 }
  0x1d   :  { %p1033_p0 = por %p1032_p13, %p1031_p12 }
  0x1f   :  { %p1034_p1 = pnand %p1033_p0, %p1027_p11 }
  0x21   :  { %1037 = shalt.err (!%p1034_p1)
}
  0x22   :  { %22 = dma.hbm_to_vmem [thread:$0]  %s1285_s0, 512, %s1118_s15, [#allocation7], %s1090_s24, %s1090_s24, %s1091_s25  }
  0x23   :  { %s1092_s10 = smov [#allocation11]   ;;  %s1038_s14 = scalar_lea.hbm %s1287_s2, 512 }
  0x24   :  { %s40_s11 = sshll.u32 %s1092_s10, 4  ;;  %p1039_p2 = scmp.ne.s32.totalorder %s1287_s2, %s1038_s14  ;;  %s41_s11 = int_to_ptr.vmem [resolvable:$true] %s40_s11 }
  0x25   :  { %p1042_p3 = scmp.lt.u32.totalorder %s1038_s14, %s1287_s2 }
  0x27   :  { %p1044_p4 = pnand %p1042_p3, %p1039_p2 }
  0x29   :  { %1047 = shalt.err (!%p1044_p4)
}
  0x2a   :  { %s1048_s20 = scalar_lea.vmem %s41_s11, 512  ;;  %p1053_p6 = scmp.lt.s32.totalorder %s41_s11, %s41_s11 }
  0x2b   :  { %p1049_p5 = scmp.ne.s32.totalorder %s41_s11, %s1048_s20  ;;  %p1054_p7 = scmp.lt.s32.totalorder %s1048_s20, %s1048_s20 }
  0x2d   :  { %p1055_p8 = por %p1054_p7, %p1053_p6 }
  0x2f   :  { %p1056_p9 = pnand %p1055_p8, %p1049_p5 }
  0x31   :  { %1059 = shalt.err (!%p1056_p9)
}
  0x32   :  { %46 = dma.hbm_to_vmem [thread:$0]  %s1287_s2, 512, %s41_s11, [#allocation10], %s1090_s24, %s1090_s24, %s1091_s25  }
  0x33   :  { %1082 = dma.done.wait [#allocation7], 512  }
  0x34   :  { %1083 = vsyncadd [#allocation7], 4294966784 }
  0x35   :  { %1084 = dma.done.wait [#allocation10], 1024  }
  0x36   :  { %1085 = vsyncadd [#allocation10], 4294966272  ;;  %vm68_vm0 = vcmask 261120   ;;  %v1093_v0 = vmov 0.0   ;;  %vm1094_vm1 = vmmov 0   ;;  %v90_v1 = vld [vmem:[#allocation9] sm:$0xff] }
  0x37   :  { %918 = vmatprep.subr.mxu0 %v1093_v0  ;;  %82 = vst.msk [vmem:[#allocation5] sm:$0xff] %vm68_vm0, %v1093_v0  ;;  %83 = vst.msk [vmem:[#allocation5 + $0x8] sm:$0xff] %vm68_vm0, %v1093_v0  ;;  %920 = vmatprep.mubr.msk.f32.mxu0 %vm1094_vm1, %v1093_v0  ;;  %v60_v2 = vld [vmem:[#allocation6] sm:$0xff]  ;;  %v91_v3 = vld [vmem:[#allocation9 + $0x8] sm:$0xff]  ;;  %vm73_vm2 = vcmask 7168   ;;  %v1095_v17 = vmov -inf  }
  0x38   :  { %84 = vst.msk [vmem:[#allocation5 + $0x10] sm:$0xff] %vm68_vm0, %v1093_v0  ;;  %85 = vst.msk [vmem:[#allocation5 + $0x18] sm:$0xff] %vm68_vm0, %v1093_v0  ;;  %923 = vmatprep.subr.mxu1 %v1093_v0  ;;  %925 = vmatprep.mubr.msk.f32.mxu1 %vm1094_vm1, %v1093_v0  ;;  %v64_v4 = vmul.f32 0.17677669, %v60_v2  ;;  %v61_v5 = vld [vmem:[#allocation6 + $0x8] sm:$0xff]  ;;  %v62_v6 = vld [vmem:[#allocation6 + $0x10] sm:$0xff] }
  0x39   :  { %919 = vmatpush3.xpose.msk.msra.mxu0 %vm68_vm0, %v90_v1  ;;  %924 = vmatpush3.xpose.msk.msra.mxu1 %vm68_vm0, %v91_v3  ;;  %v65_v7 = vmul.f32 0.17677669, %v61_v5  ;;  %v66_v8 = vmul.f32 0.17677669, %v62_v6  ;;  %v63_v9 = vld [vmem:[#allocation6 + $0x18] sm:$0xff]  ;;  %v92_v11 = vld [vmem:[#allocation9 + $0x10] sm:$0xff] }
  0x3a   :  { %928 = vmatprep.subr.mxu0 %v1093_v0  ;;  %933 = vmatprep.subr.mxu1 %v1093_v0  ;;  %69 = vst.msk [vmem:[#allocation2] sm:$0xff] %vm68_vm0, %v64_v4  ;;  %v67_v10 = vmul.f32 0.17677669, %v63_v9  ;;  %v93_v13 = vld [vmem:[#allocation9 + $0x18] sm:$0xff]  ;;  %vm403_vm3 = vcmask 64512   ;;  %v1096_v30 = vmov 0  }
  0x3b   :  { %70 = vst.msk [vmem:[#allocation2 + $0x8] sm:$0xff] %vm68_vm0, %v65_v7  ;;  %71 = vst.msk [vmem:[#allocation2 + $0x10] sm:$0xff] %vm68_vm0, %v66_v8  ;;  %968 = vset.pattern.permute.xlu0 %v1096_v30  ;;  %969 = vset.pattern.permute.xlu1 %v1096_v30  ;;  %v521_v47 = vld [vmem:[#allocation11] sm:$0xff]  ;;  %v522_v48 = vld [vmem:[#allocation11 + $0x8] sm:$0xff]  ;;  %s1097_s2 = smov [#allocation12]  }
  0x3c   :  { %72 = vst.msk [vmem:[#allocation2 + $0x18] sm:$0xff] %vm68_vm0, %v67_v10  ;;  %v523_v60 = vld [vmem:[#allocation11 + $0x10] sm:$0xff]  ;;  %v524_v1 = vld [vmem:[#allocation11 + $0x18] sm:$0xff]  ;;  %s877_s21 = sshll.u32 %s1097_s2, 4  ;;  %s878_s21 = int_to_ptr.vmem [resolvable:$true] %s877_s21 }
  0x3d   :  { %74 = vst.msk [vmem:[#allocation3] sm:$0xff] %vm73_vm2, %v1095_v17  ;;  %75 = vst.msk [vmem:[#allocation3 + $0x8] sm:$0xff] %vm73_vm2, %v1095_v17  ;;  %s1060_s22 = scalar_lea.vmem %s878_s21, 512  ;;  %p1065_p11 = scmp.lt.s32.totalorder %s878_s21, %s878_s21 }
  0x3e   :  { %76 = vst.msk [vmem:[#allocation3 + $0x10] sm:$0xff] %vm73_vm2, %v1095_v17  ;;  %77 = vst.msk [vmem:[#allocation3 + $0x18] sm:$0xff] %vm73_vm2, %v1095_v17  ;;  %p1061_p10 = scmp.ne.s32.totalorder %s878_s21, %s1060_s22  ;;  %p1066_p12 = scmp.lt.s32.totalorder %s1060_s22, %s1060_s22 }
  0x3f   :  { %78 = vst.msk [vmem:[#allocation4] sm:$0xff] %vm73_vm2, %v1093_v0  ;;  %79 = vst.msk [vmem:[#allocation4 + $0x8] sm:$0xff] %vm73_vm2, %v1093_v0 }
  0x40   :  { %80 = vst.msk [vmem:[#allocation4 + $0x10] sm:$0xff] %vm73_vm2, %v1093_v0  ;;  %81 = vst.msk [vmem:[#allocation4 + $0x18] sm:$0xff] %vm73_vm2, %v1093_v0  ;;  %p1067_p13 = por %p1066_p12, %p1065_p11 }
  0x41   :  { %v86_v12 = vld [vmem:[#allocation2] sm:$0xff] }
  0x42   :  { %921 = vmatmul.mubr.msk.f32.vlgmr.msra.gmra.mrb[0].mxu0 %vm68_vm0, %v86_v12  ;;  %v87_v14 = vld [vmem:[#allocation2 + $0x8] sm:$0xff]  ;;  %v88_v15 = vld [vmem:[#allocation2 + $0x10] sm:$0xff]  ;;  %p1068_p0 = pnand %p1067_p13, %p1061_p10 }
  0x43   :  { %926 = vmatmul.mubr.msk.f32.vlgmr.msra.gmra.mrb[0].mxu1 %vm68_vm0, %v87_v14  ;;  %929 = vmatpush3.xpose.msk.msra.mxu0 %vm68_vm0, %v92_v11  ;;  %v89_v16 = vld [vmem:[#allocation2 + $0x18] sm:$0xff] }
  0x44   :  { %930 = vmatprep.mubr.msk.f32.mxu0 %vm1094_vm1, %v1093_v0  ;;  %934 = vmatpush3.xpose.msk.msra.mxu1 %vm68_vm0, %v93_v13  ;;  %v1224_v31 = vld [vmem:[#allocation3] sm:$0xff]  ;;  %v400_v34 = vld [vmem:[#allocation3 + $0x8] sm:$0xff] }
  0x45   :  { %935 = vmatprep.mubr.msk.f32.mxu1 %vm1094_vm1, %v1093_v0  ;;  %938 = vmatprep.subr.mxu0 %v1093_v0  ;;  %v1229_v35 = vld [vmem:[#allocation3 + $0x10] sm:$0xff]  ;;  %v402_v41 = vld [vmem:[#allocation3 + $0x18] sm:$0xff] }
  0x46   :  { %931 = vmatmul.mubr.msk.f32.vlgmr.msra.gmra.mrb[2].mxu0 %vm68_vm0, %v88_v15  ;;  %943 = vmatprep.subr.mxu1 %v1093_v0  ;;  %v464_v15 = vld [vmem:[#allocation4] sm:$0xff] }
  0x47   :  { %936 = vmatmul.mubr.msk.f32.vlgmr.msra.gmra.mrb[2].mxu1 %vm68_vm0, %v89_v16  ;;  %940 = vmatprep.mubr.msk.f32.mxu0 %vm1094_vm1, %v1093_v0 }
  0x48   :  { %945 = vmatprep.mubr.msk.f32.mxu1 %vm1094_vm1, %v1093_v0  ;;  %939 = vmatpush3.msra.mxu0 %v521_v47 }
  0x49   :  { %948 = vmatprep.subr.mxu0 %v1093_v0  ;;  %944 = vmatpush3.msra.mxu1 %v522_v48 }
  0x4a   :  { %953 = vmatprep.subr.mxu1 %v1093_v0 }
 0x115   :  { %v167_v18 = vpop.f32.mrb[0].mxu0 }
 0x116   :  { %v922_v19 = vpop.f32.mrb[1].mxu0  ;;  %v404_v20 = vsel %vm403_vm3, %v167_v18, -inf  ;;  %v243_v21 = vpop.f32.mrb[0].mxu1 }
 0x117   :  { %405 = vmax.xlane.f32.xlu0 %v404_v20  ;;  %v927_v22 = vpop.f32.mrb[1].mxu1  ;;  %v407_v23 = vsel %vm403_vm3, %v243_v21, -inf }
 0x118   :  { %v466_v22 = vld [vmem:[#allocation4 + $0x10] sm:$0xff] }
 0x119   :  { %v319_v24 = vpop.f32.mrb[2].mxu0 }
 0x11a   :  { %v932_v25 = vpop.f32.mrb[3].mxu0  ;;  %v410_v26 = vsel %vm403_vm3, %v319_v24, -inf  ;;  %v395_v27 = vpop.f32.mrb[2].mxu1 }
 0x11b   :  { %408 = vmax.xlane.f32.xlu0 %v407_v23  ;;  %411 = vmax.xlane.f32.xlu1 %v410_v26  ;;  %v937_v28 = vpop.f32.mrb[3].mxu1  ;;  %v413_v29 = vsel %vm403_vm3, %v395_v27, -inf  ;;  %v467_v26 = vld [vmem:[#allocation4 + $0x18] sm:$0xff] }
 0x11f   :  { %414 = vmax.xlane.f32.xlu1 %v413_v29 }
 0x1a4   :  { %v406_v32 = vpop.xlane.xlu0 %405 }
 0x1a5   :  { %v1227_v33 = vmax.f32 %v1224_v31, %v406_v32 }
 0x1a7   :  { %v420_v36 = vsub.f32 %v1224_v31, %v1227_v33  ;;  %825 = vst.msk [vmem:[#allocation3] sm:$0xff] %vm73_vm2, %v1227_v33  ;;  %434 = vperm.xlu0 %968, %v1227_v33  }
 0x1a8   :  { %v409_v37 = vpop.xlane.xlu0 %408  ;;  %v412_v38 = vpop.xlane.xlu1 %411 }
 0x1a9   :  { %v417_v39 = vmax.f32 %v400_v34, %v409_v37  ;;  %v418_v40 = vmax.f32 %v1229_v35, %v412_v38  ;;  %v424_v9 = vmul.f32 1.442695, %v420_v36 }
 0x1ab   :  { %v421_v42 = vsub.f32 %v400_v34, %v417_v39  ;;  %826 = vst.msk [vmem:[#allocation3 + $0x8] sm:$0xff] %vm73_vm2, %v417_v39  ;;  %439 = vperm.xlu1 %969, %v417_v39   ;;  %v422_v43 = vsub.f32 %v1229_v35, %v418_v40  ;;  %827 = vst.msk [vmem:[#allocation3 + $0x10] sm:$0xff] %vm73_vm2, %v418_v40  ;;  %v493_v39 = vld [vmem:[#allocation5] sm:$0xff] }
 0x1ac   :  { %v415_v44 = vpop.xlane.xlu1 %414 }
 0x1ad   :  { %v419_v45 = vmax.f32 %v402_v41, %v415_v44  ;;  %v426_v7 = vmul.f32 1.442695, %v421_v42  ;;  %v494_v42 = vld [vmem:[#allocation5 + $0x8] sm:$0xff] }
 0x1af   :  { %444 = vperm.xlu1 %969, %v418_v40   ;;  %v423_v46 = vsub.f32 %v402_v41, %v419_v45  ;;  %828 = vst.msk [vmem:[#allocation3 + $0x18] sm:$0xff] %vm73_vm2, %v419_v45 }
 0x1b1   :  { %v430_v10 = vmul.f32 1.442695, %v423_v46 }
 0x1b3   :  { %449 = vperm.xlu1 %969, %v419_v45  }
 0x226   :  { %v435_v49 = vpop.permute.xlu0 %434 }
 0x227   :  { %v452_v50 = vsub.f32 %v167_v18, %v435_v49  ;;  %v465_v18 = vld [vmem:[#allocation4 + $0x8] sm:$0xff]  ;;  %v495_v49 = vld [vmem:[#allocation5 + $0x10] sm:$0xff] }
 0x229   :  { %v456_v51 = vmul.f32 1.442695, %v452_v50 }
 0x22a   :  { %v440_v52 = vpop.permute.xlu1 %439 }
 0x22b   :  { %970 = vpow2.f32 %v456_v51  ;;  %v453_v53 = vsub.f32 %v243_v21, %v440_v52 }
 0x22d   :  { %v458_v54 = vmul.f32 1.442695, %v453_v53 }
 0x22e   :  { %v445_v55 = vpop.permute.xlu1 %444 }
 0x22f   :  { %972 = vpow2.f32 %v458_v54  ;;  %v454_v56 = vsub.f32 %v319_v24, %v445_v55  ;;  %v496_v54 = vld [vmem:[#allocation5 + $0x18] sm:$0xff] }
 0x231   :  { %v460_v57 = vmul.f32 1.442695, %v454_v56 }
 0x232   :  { %v450_v58 = vpop.permute.xlu1 %449 }
 0x233   :  { %974 = vpow2.f32 %v460_v57  ;;  %v455_v59 = vsub.f32 %v395_v27, %v450_v58 }
 0x235   :  { %v971_v61 = vpop.eup %970  ;;  %v462_v62 = vmul.f32 1.442695, %v455_v59 }
 0x236   :  { %941 = vmatmul.mubr.msk.f32.vlgmr.msra.gmra.mrb[4].mxu0 %vm403_vm3, %v971_v61  ;;  %v472_v63 = vsel %vm403_vm3, %v971_v61, 0.0 }
 0x237   :  { %976 = vpow2.f32 %v462_v62  ;;  %473 = vadd.xlane.f32.xlu1 %v472_v63  ;;  %949 = vmatpush3.msra.mxu0 %v523_v60 }
 0x238   :  { %950 = vmatprep.mubr.msk.f32.mxu0 %vm1094_vm1, %v1093_v0  ;;  %978 = vpow2.f32 %v426_v7 }
 0x239   :  { %v973_v2 = vpop.eup %972  ;;  %980 = vpow2.f32 %v424_v9 }
 0x23a   :  { %946 = vmatmul.mubr.msk.f32.vlgmr.msra.gmra.mrb[4].mxu1 %vm403_vm3, %v973_v2  ;;  %v475_v3 = vsel %vm403_vm3, %v973_v2, 0.0 }
 0x23b   :  { %476 = vadd.xlane.f32.xlu0 %v475_v3  ;;  %954 = vmatpush3.msra.mxu1 %v524_v1 }
 0x23c   :  { %955 = vmatprep.mubr.msk.f32.mxu1 %vm1094_vm1, %v1093_v0  ;;  %v428_v0 = vmul.f32 1.442695, %v422_v43 }
 0x23d   :  { %v975_v4 = vpop.eup %974 }
 0x23e   :  { %951 = vmatmul.mubr.msk.f32.vlgmr.msra.gmra.mrb[6].mxu0 %vm403_vm3, %v975_v4  ;;  %v478_v5 = vsel %vm403_vm3, %v975_v4, 0.0  ;;  %982 = vpow2.f32 %v428_v0 }
 0x23f   :  { %479 = vadd.xlane.f32.xlu1 %v478_v5  ;;  %984 = vpow2.f32 %v430_v10 }
 0x241   :  { %v977_v6 = vpop.eup %976 }
 0x242   :  { %956 = vmatmul.mubr.msk.f32.vlgmr.msra.gmra.mrb[6].mxu1 %vm403_vm3, %v977_v6  ;;  %v481_v8 = vsel %vm403_vm3, %v977_v6, 0.0  ;;  %v979_v11 = vpop.eup %978 }
 0x243   :  { %482 = vadd.xlane.f32.xlu1 %v481_v8  ;;  %v981_v12 = vpop.eup %980  ;;  %v469_v20 = vmul.f32 %v979_v11, %v465_v18 }
 0x244   :  { %v468_v16 = vmul.f32 %v981_v12, %v464_v15 }
 0x248   :  { %v983_v13 = vpop.eup %982 }
 0x249   :  { %v985_v14 = vpop.eup %984  ;;  %v470_v24 = vmul.f32 %v983_v13, %v466_v22 }
 0x24a   :  { %v471_v29 = vmul.f32 %v985_v14, %v467_v26 }
 0x251   :  { %504 = vperm.xlu0 %968, %v979_v11  }
 0x254   :  { %499 = vperm.xlu1 %969, %v981_v12  }
 0x258   :  { %509 = vperm.xlu1 %969, %v983_v13  }
 0x25c   :  { %514 = vperm.xlu1 %969, %v985_v14  }
 0x2c4   :  { %v474_v17 = vpop.xlane.xlu1 %473 }
 0x2c5   :  { %v484_v19 = vadd.f32 %v474_v17, %v468_v16 }
 0x2c7   :  { %489 = vst.msk [vmem:[#allocation4] sm:$0xff] %vm73_vm2, %v484_v19 }
 0x2c8   :  { %v477_v21 = vpop.xlane.xlu0 %476 }
 0x2c9   :  { %v485_v23 = vadd.f32 %v477_v21, %v469_v20 }
 0x2cb   :  { %490 = vst.msk [vmem:[#allocation4 + $0x8] sm:$0xff] %vm73_vm2, %v485_v23 }
 0x2cc   :  { %v480_v25 = vpop.xlane.xlu1 %479 }
 0x2cd   :  { %v486_v27 = vadd.f32 %v480_v25, %v470_v24 }
 0x2ce   :  { %v832_v28 = vld [vmem:[#allocation4] sm:$0xff] }
 0x2cf   :  { %491 = vst.msk [vmem:[#allocation4 + $0x10] sm:$0xff] %vm73_vm2, %v486_v27  ;;  %986 = vrcp.f32 %v832_v28 }
 0x2d0   :  { %v483_v30 = vpop.xlane.xlu1 %482  ;;  %v505_v43 = vpop.permute.xlu0 %504 }
 0x2d1   :  { %v487_v31 = vadd.f32 %v483_v30, %v471_v29  ;;  %v518_v48 = vmul.f32 %v505_v43, %v494_v42 }
 0x2d2   :  { %v833_v32 = vld [vmem:[#allocation4 + $0x8] sm:$0xff] }
 0x2d3   :  { %492 = vst.msk [vmem:[#allocation4 + $0x18] sm:$0xff] %vm73_vm2, %v487_v31  ;;  %988 = vrcp.f32 %v833_v32 }
 0x2d4   :  { %v500_v40 = vpop.permute.xlu1 %499 }
 0x2d5   :  { %v517_v41 = vmul.f32 %v500_v40, %v493_v39 }
 0x2d6   :  { %v834_v33 = vld [vmem:[#allocation4 + $0x10] sm:$0xff] }
 0x2d7   :  { %990 = vrcp.f32 %v834_v33 }
 0x2d8   :  { %v510_v47 = vpop.permute.xlu1 %509 }
 0x2d9   :  { %v987_v34 = vpop.eup %986  ;;  %v519_v53 = vmul.f32 %v510_v47, %v495_v49 }
 0x2da   :  { %846 = vperm.xlu1 %969, %v987_v34   ;;  %v835_v35 = vld [vmem:[#allocation4 + $0x18] sm:$0xff] }
 0x2db   :  { %992 = vrcp.f32 %v835_v35 }
 0x2dc   :  { %v515_v55 = vpop.permute.xlu1 %514 }
 0x2dd   :  { %v989_v36 = vpop.eup %988  ;;  %v520_v59 = vmul.f32 %v515_v55, %v496_v54 }
 0x2de   :  { %851 = vperm.xlu0 %968, %v989_v36  }
 0x2e1   :  { %v991_v37 = vpop.eup %990 }
 0x2e2   :  { %856 = vperm.xlu1 %969, %v991_v37  }
 0x2e5   :  { %v993_v38 = vpop.eup %992 }
 0x2e6   :  { %861 = vperm.xlu0 %968, %v993_v38  }
 0x309   :  { %v594_v44 = vpop.f32.mrb[4].mxu0 }
 0x30a   :  { %v817_v45 = vadd.f32 %v594_v44, %v517_v41  ;;  %v942_v46 = vpop.f32.mrb[5].mxu0 }
 0x30c   :  { %821 = vst.msk [vmem:[#allocation5] sm:$0xff] %vm68_vm0, %v817_v45 }
 0x30d   :  { %v667_v50 = vpop.f32.mrb[4].mxu1 }
 0x30e   :  { %v818_v51 = vadd.f32 %v667_v50, %v518_v48  ;;  %v947_v52 = vpop.f32.mrb[5].mxu1 }
 0x310   :  { %822 = vst.msk [vmem:[#allocation5 + $0x8] sm:$0xff] %vm68_vm0, %v818_v51 }
 0x311   :  { %v740_v56 = vpop.f32.mrb[6].mxu0 }
 0x312   :  { %v819_v57 = vadd.f32 %v740_v56, %v519_v53  ;;  %v952_v58 = vpop.f32.mrb[7].mxu0 }
 0x313   :  { %v840_v1 = vld [vmem:[#allocation5] sm:$0xff] }
 0x314   :  { %823 = vst.msk [vmem:[#allocation5 + $0x10] sm:$0xff] %vm68_vm0, %v819_v57 }
 0x315   :  { %v813_v60 = vpop.f32.mrb[6].mxu1 }
 0x316   :  { %v820_v61 = vadd.f32 %v813_v60, %v520_v59  ;;  %v957_v62 = vpop.f32.mrb[7].mxu1 }
 0x317   :  { %v841_v3 = vld [vmem:[#allocation5 + $0x8] sm:$0xff] }
 0x318   :  { %824 = vst.msk [vmem:[#allocation5 + $0x18] sm:$0xff] %vm68_vm0, %v820_v61 }
 0x31b   :  { %v842_v7 = vld [vmem:[#allocation5 + $0x10] sm:$0xff] }
 0x31f   :  { %v843_v0 = vld [vmem:[#allocation5 + $0x18] sm:$0xff] }
 0x359   :  { %v847_v63 = vpop.permute.xlu1 %846 }
 0x35a   :  { %v864_v2 = vmul.f32 %v847_v63, %v840_v1 }
 0x35c   :  { %868 = vst.msk [vmem:[#allocation12] sm:$0xff] %vm68_vm0, %v864_v2 }
 0x35d   :  { %v852_v4 = vpop.permute.xlu0 %851 }
 0x35e   :  { %v865_v5 = vmul.f32 %v852_v4, %v841_v3 }
 0x360   :  { %869 = vst.msk [vmem:[#allocation12 + $0x8] sm:$0xff] %vm68_vm0, %v865_v5 }
 0x361   :  { %v857_v6 = vpop.permute.xlu1 %856 }
 0x362   :  { %v866_v8 = vmul.f32 %v857_v6, %v842_v7 }
 0x364   :  { %870 = vst.msk [vmem:[#allocation12 + $0x10] sm:$0xff] %vm68_vm0, %v866_v8 }
 0x365   :  { %v862_v9 = vpop.permute.xlu0 %861 }
 0x366   :  { %v867_v10 = vmul.f32 %v862_v9, %v843_v0 }
 0x368   :  { %871 = vst.msk [vmem:[#allocation12 + $0x18] sm:$0xff] %vm68_vm0, %v867_v10 }
 0x369   :  { %1071 = shalt.err (!%p1068_p0)
}
 0x36a   :  { %s1072_s27 = scalar_lea.hbm %s1288_s3, 512 }
 0x36b   :  { %p1073_p1 = scmp.ne.s32.totalorder %s1288_s3, %s1072_s27  ;;  %p1076_p2 = scmp.lt.u32.totalorder %s1072_s27, %s1288_s3 }
 0x36d   :  { %p1078_p3 = pnand %p1076_p2, %p1073_p1 }
 0x36f   :  { %1081 = shalt.err (!%p1078_p3)
}
 0x370   :  { %883 = dma.vmem_to_hbm [thread:$0]  %s878_s21, 512, %s1288_s3, [#allocation8], %s1090_s24, %s1090_s24, %s1091_s25  }
 0x371   :  { %1086 = dma.done.wait [#allocation8], 512  }
 0x372   :  { %1087 = vsyncadd [#allocation8], 4294966784 }
 0x373   :  { %887 = vsyncpa [#allocation7], 1 }
 0x374   :  { %888 = vsyncpa [#allocation10], 1 }
 0x375   :  { %889 = vsyncpa [#allocation8], 1 }

</bundles_post_ra>
